<compile_context>
chip_gen: v5e
topology: v5e:2x2
jax: 0.10.0
libtpu: 0.0.40
codegen_flags: <defaults>
</compile_context>

<pallas_src>
import jax
import jax.numpy as jnp
from jax.experimental import pallas as pl
from jax.experimental.pallas import tpu as pltpu


def _round_up(x, m):
    return ((x + m - 1) // m) * m


def _pick_tile(n, target, multiple):
    """Largest divisor of n that is <= target and a multiple of `multiple`;
    falls back to n itself (full extent) if none exists."""
    if n <= target:
        return n
    for d in range(target, multiple - 1, -multiple):
        if n % d == 0:
            return d
    return n


def _pick_time_chunk(t, target):
    """Prefer a chunk length that divides T to avoid padded recurrence steps."""
    if t <= target:
        return t
    for tc in range(target, max(1, target // 2) - 1, -1):
        if t % tc == 0:
            return tc
    return target


def _vmem_limit_bytes():
    """~3/4 of physical VMEM, capped at 96 MiB (96 MiB v5e/v6e, 48 MiB v7x)."""
    try:
        cap = int(pltpu.get_tpu_info().vmem_capacity_bytes)
    except Exception:
        cap = 128 * 1024 * 1024
    return min(96 * 1024 * 1024, (cap * 3) // 4)


# ---------------------------------------------------------------------------
# Kernels 1 & 3: rows-parallel, N-tiled matmul + bias  (x@W_ih and h@W_fc).
# ---------------------------------------------------------------------------
def _matmul_bias_kernel(x_ref, w_ref, b_ref, o_ref):
    o_ref[...] = (
        jnp.dot(x_ref[...], w_ref[...], preferred_element_type=jnp.float32)
        + b_ref[...].astype(jnp.float32)
    ).astype(o_ref.dtype)


def _matmul_bias(x, w, b, *, tm, tn, out_dtype, vmem_limit):
    """(M, K) @ (K, N) + (1, N) -> (M, N), tiled over rows and columns.

    Grid is (N tiles, M tiles): the column (weight) tile is the slow axis so
    the (K, tn) weight block is reused across the whole inner row sweep.
    """
    M, K = x.shape
    N = w.shape[1]
    assert M % tm == 0 and N % tn == 0, (M, tm, N, tn)
    return pl.pallas_call(
        _matmul_bias_kernel,
        out_shape=jax.ShapeDtypeStruct((M, N), out_dtype),
        grid_spec=pltpu.PrefetchScalarGridSpec(
            num_scalar_prefetch=0,
            grid=(N // tn, M // tm),
            in_specs=[
                pl.BlockSpec((tm, K), lambda j, i: (i, 0)),
                pl.BlockSpec((K, tn), lambda j, i: (0, j)),
                pl.BlockSpec((1, tn), lambda j, i: (0, j)),
            ],
            out_specs=pl.BlockSpec((tm, tn), lambda j, i: (i, j)),
        ),
        compiler_params=pltpu.CompilerParams(
            dimension_semantics=("parallel", "parallel"),
            vmem_limit_bytes=vmem_limit,
        ),
    )(x, w, b)


# ---------------------------------------------------------------------------
# Kernel 2: the LSTM recurrence.  Only h @ W_hh + gate math in the time loop.
# gates_x / w_hh / emitted h may be bf16; h/c state and gate math stay f32.
# ---------------------------------------------------------------------------
def _lstm_recurrence_kernel(gx_ref, whh_ref, h_out_ref, h_sc, c_sc):
    H = h_sc.shape[-1]
    TC = gx_ref.shape[0]          # static time-chunk length

    # A new batch tile starts at time-chunk 0: reset the carried state.
    @pl.when(pl.program_id(1) == 0)
    def _():
        h_sc[...] = jnp.zeros_like(h_sc)
        c_sc[...] = jnp.zeros_like(c_sc)

    w_hh = whh_ref[...]           # (H, 4H) compute dtype; hoisted out of loop
    mm_dtype = w_hh.dtype

    def step(t, carry):
        h_prev, c_prev = carry    # f32
        # gates_x already holds x_t @ W_ih + (b_ih + b_hh); only the recurrent
        # matmul remains here (bf16 MXU operands, f32 accumulation).
        gates = gx_ref[t].astype(jnp.float32) + jnp.dot(
            h_prev.astype(mm_dtype), w_hh, preferred_element_type=jnp.float32)
        # PyTorch gate order: i, f, g, o.  (At realistic H -- a multiple of
        # 128 -- these slices are lane-aligned.)
        i_g = jax.nn.sigmoid(gates[:, 0 * H:1 * H])
        f_g = jax.nn.sigmoid(gates[:, 1 * H:2 * H])
        g_g = jnp.tanh(gates[:, 2 * H:3 * H])
        o_g = jax.nn.sigmoid(gates[:, 3 * H:4 * H])
        c_new = f_g * c_prev + i_g * g_g
        h_new = o_g * jnp.tanh(c_new)
        h_out_ref[t] = h_new.astype(h_out_ref.dtype)
        return h_new, c_new

    # NOTE: at large H / b_tile, unroll=True may spill vregs; drop to 2-4 if
    # the bundle dump shows ld/st slots saturated by spills.
    h_fin, c_fin = jax.lax.fori_loop(
        0, TC, step, (h_sc[...], c_sc[...]), unroll=True)
    h_sc[...] = h_fin
    c_sc[...] = c_fin


# ---------------------------------------------------------------------------
# Wrapper: DecoderRNN.forward
# ---------------------------------------------------------------------------
def decoder_rnn_forward(features, captions, params, *, time_chunk=16,
                        compute_dtype=jnp.bfloat16):
    """Pallas implementation of DecoderRNN.forward.

    features: (B, E) float32
    captions: (B, L) int32 token ids
    returns:  (B, L, V) float32 logits (time length = 1 feature + (L-1) tokens)

    compute_dtype: dtype of MXU operands and of the gates_x / h activation
    streams (bf16 recommended on all chips; f32 for exact testing).
    """
    emb = params["embedding"]          # (V, E)
    w_ih = params["w_ih"]              # (E, 4H)
    w_hh = params["w_hh"]              # (H, 4H)
    b = params["b"]                    # (1, 4H)  == b_ih + b_hh
    w_fc = params["w_fc"]              # (H, V)
    b_fc = params["b_fc"]              # (1, V)

    B, E = features.shape
    H = w_hh.shape[0]
    V = w_fc.shape[1]
    vmem_limit = _vmem_limit_bytes()

    # ---- glue (plain JAX): embedding lookup + concat + padding/layout ----
    # TODO(synk): the embedding gather could be fused into kernel 1 via
    # PrefetchScalarGridSpec + pl.Element row gather; kept in XLA here.
    cap_emb = jnp.take(emb, captions[:, :-1], axis=0)                # (B, L-1, E)
    inputs = jnp.concatenate(
        [features[:, None, :], cap_emb], 1).astype(jnp.float32)      # (B, T, E)
    T = inputs.shape[1]

    # Batch padding / tiling.  Keep >= 2 batch tiles when the batch is big
    # enough so the "parallel" axis can be split across v7x's two TensorCores.
    B_pad = _round_up(B, 8)
    if B_pad < 16:
        b_tile = B_pad
    elif B_pad <= 256:
        b_tile = _round_up((B_pad + 1) // 2, 8)
        B_pad = 2 * b_tile
    else:
        b_tile = 128
        B_pad = _round_up(B_pad, 128)

    TC = _pick_time_chunk(T, time_chunk)
    T_pad = _round_up(T, TC)

    x = jnp.pad(inputs, ((0, B_pad - B), (0, T_pad - T), (0, 0)))
    x_tm = jnp.transpose(x, (1, 0, 2))                               # (T_pad, B_pad, E)
    M = T_pad * B_pad

    # Weights / activations for MXU in compute_dtype; biases stay f32.
    x_rows = x_tm.reshape(M, E).astype(compute_dtype)
    w_ih_c = w_ih.astype(compute_dtype)
    w_hh_c = w_hh.astype(compute_dtype)
    w_fc_c = w_fc.astype(compute_dtype)
    b_f32 = b.astype(jnp.float32)
    b_fc_f32 = b_fc.astype(jnp.float32)

    tm = _pick_tile(M, 512, 8)          # row tile for both parallel matmuls
    tn1 = _pick_tile(4 * H, 512, 128)   # column tile, input projection
    tn2 = _pick_tile(V, 512, 128)       # column tile, vocab projection

    # 1) Time-parallel input projection (hoisted out of the recurrence).
    #    Emitted in compute_dtype: halves the HBM stream the recurrence reads.
    gates_x = _matmul_bias(
        x_rows, w_ih_c, b_f32, tm=tm, tn=tn1,
        out_dtype=compute_dtype, vmem_limit=vmem_limit,
    ).reshape(T_pad, B_pad, 4 * H)

    # 2) Serial LSTM recurrence; emits hidden states only (compute_dtype).
    h_all = pl.pallas_call(
        _lstm_recurrence_kernel,
        out_shape=jax.ShapeDtypeStruct((T_pad, B_pad, H), compute_dtype),
        grid_spec=pltpu.PrefetchScalarGridSpec(
            num_scalar_prefetch=0,
            grid=(B_pad // b_tile, T_pad // TC),     # (parallel batch, serial time)
            in_specs=[
                pl.BlockSpec((TC, b_tile, 4 * H), lambda bi, ci: (ci, bi, 0)),
                pl.BlockSpec((H, 4 * H), lambda bi, ci: (0, 0)),
            ],
            out_specs=pl.BlockSpec((TC, b_tile, H), lambda bi, ci: (ci, bi, 0)),
            scratch_shapes=[
                pltpu.VMEM((b_tile, H), jnp.float32),   # h state (f32)
                pltpu.VMEM((b_tile, H), jnp.float32),   # c state (f32)
            ],
        ),
        compiler_params=pltpu.CompilerParams(
            dimension_semantics=("parallel", "arbitrary"),
            vmem_limit_bytes=vmem_limit,
        ),
    )(gates_x, w_hh_c)

    # Re-layout the SMALL (T,B,H) hidden tensor to batch-major so the FC
    # kernel emits logits already in (B, T, V) order — no huge logits
    # transpose afterwards.
    h_rows = jnp.transpose(h_all, (1, 0, 2)).reshape(M, H)

    # 3) Time-parallel vocab projection (dominant FLOPs at real vocab sizes),
    #    tiled over the vocab axis so W_fc / output blocks stay a few MB.
    logits = _matmul_bias(
        h_rows, w_fc_c, b_fc_f32, tm=tm, tn=tn2,
        out_dtype=jnp.float32, vmem_limit=vmem_limit,
    ).reshape(B_pad, T_pad, V)

    # Slice off padding; already batch_first (B, T, V).
    return logits[:B, :T]


# ---------------------------------------------------------------------------
# Pure-JAX reference (same math) used to sanity-check the kernels.
# ---------------------------------------------------------------------------
def _reference_forward(features, captions, params):
    emb, w_ih, w_hh, b = params["embedding"], params["w_ih"], params["w_hh"], params["b"]
    w_fc, b_fc = params["w_fc"], params["b_fc"]
    H = w_hh.shape[0]
    cap_emb = jnp.take(emb, captions[:, :-1], axis=0)
    inputs = jnp.concatenate([features[:, None, :], cap_emb], axis=1)
    B, T, _ = inputs.shape

    def step(carry, x_t):
        h, c = carry
        g = x_t @ w_ih + h @ w_hh + b[0]
        i = jax.nn.sigmoid(g[:, 0 * H:1 * H])
        f = jax.nn.sigmoid(g[:, 1 * H:2 * H])
        gg = jnp.tanh(g[:, 2 * H:3 * H])
        o = jax.nn.sigmoid(g[:, 3 * H:4 * H])
        c = f * c + i * gg
        h = o * jnp.tanh(c)
        return (h, c), h @ w_fc + b_fc[0]

    init = (jnp.zeros((B, H), jnp.float32), jnp.zeros((B, H), jnp.float32))
    _, ys = jax.lax.scan(step, init, jnp.transpose(inputs, (1, 0, 2)))
    return jnp.transpose(ys, (1, 0, 2))


if __name__ == "__main__":
    # Small, module-consistent shapes.
    B = 2          # batch
    E = 32         # embed_size
    H = 32         # hidden_size
    V = 128        # vocab_size
    L = 8          # caption length -> LSTM time length T = 1 + (L-1) = L

    key = jax.random.PRNGKey(0)
    k = jax.random.split(key, 8)
    scale = 0.1
    params = {
        "embedding": scale * jax.random.normal(k[0], (V, E), jnp.float32),
        "w_ih":      scale * jax.random.normal(k[1], (E, 4 * H), jnp.float32),
        "w_hh":      scale * jax.random.normal(k[2], (H, 4 * H), jnp.float32),
        "b":         scale * jax.random.normal(k[3], (1, 4 * H), jnp.float32),
        "w_fc":      scale * jax.random.normal(k[4], (H, V), jnp.float32),
        "b_fc":      scale * jax.random.normal(k[5], (1, V), jnp.float32),
    }

    features = jax.random.normal(k[6], (B, E), jnp.float32)
    captions = jax.random.randint(k[7], (B, L), 0, V, dtype=jnp.int32)

    ref = _reference_forward(features, captions, params)

    # Exact mode (all-f32 path): must match the reference tightly.
    out_f32 = decoder_rnn_forward(features, captions, params,
                                  compute_dtype=jnp.float32)
    out_f32 = jax.block_until_ready(out_f32)
    assert out_f32.shape == (B, L, V), out_f32.shape
    assert jnp.allclose(out_f32, ref, atol=1e-4, rtol=1e-4), "f32 mismatch vs reference"

    # Performance mode (bf16 MXU operands / activation streams, f32 accum).
    out_bf16 = decoder_rnn_forward(features, captions, params)
    out_bf16 = jax.block_until_ready(out_bf16)
    assert out_bf16.shape == (B, L, V), out_bf16.shape
    assert jnp.allclose(out_bf16, ref, atol=5e-2, rtol=5e-2), "bf16 mismatch vs reference"

    print("KERNEL_OK")
</pallas_src>

<mosaic_0001>
module attributes {stable_mosaic.version = 11 : i64} {
  func.func @_matmul_bias_kernel(%arg0: i32, %arg1: i32, %arg2: memref<64x32xf32, #tpu.memory_space<vmem>>, %arg3: memref<32x128xf32, #tpu.memory_space<vmem>>, %arg4: memref<1x128xf32, #tpu.memory_space<vmem>>, %arg5: memref<64x128xf32, #tpu.memory_space<vmem>>) attributes {dimension_semantics = [#tpu.dimension_semantics<parallel>, #tpu.dimension_semantics<parallel>], iteration_bounds = array<i64: 1, 1>, scalar_prefetch = 0 : i64, scratch_operands = 0 : i64, tpu.core_type = #tpu.core_type<tc>, window_params = [{transform_indices = @transform_0, window_bounds = array<i64: 64, 32>}, {transform_indices = @transform_1, window_bounds = array<i64: 32, 128>}, {transform_indices = @transform_2, window_bounds = array<i64: 1, 128>}, {transform_indices = @transform_3, window_bounds = array<i64: 64, 128>}]} {
    %c0 = arith.constant 0 : index
    %c0_0 = arith.constant 0 : index
    %0 = vector.load %arg2[%c0, %c0_0] : memref<64x32xf32, #tpu.memory_space<vmem>>, vector<64x32xf32>
    %c0_1 = arith.constant 0 : index
    %c0_2 = arith.constant 0 : index
    %1 = vector.load %arg3[%c0_1, %c0_2] : memref<32x128xf32, #tpu.memory_space<vmem>>, vector<32x128xf32>
    %cst = arith.constant dense<0.000000e+00> : vector<64x128xf32>
    %2 = tpu.matmul %0, %1, %cst {dimension_numbers = #tpu.dot_dimension_numbers<[1], [0], [0], [1], [0, 0, 1, 1], [], []>} : vector<64x32xf32>, vector<32x128xf32>, vector<64x128xf32> -> vector<64x128xf32>
    %c0_3 = arith.constant 0 : index
    %c0_4 = arith.constant 0 : index
    %3 = vector.load %arg4[%c0_3, %c0_4] : memref<1x128xf32, #tpu.memory_space<vmem>>, vector<1x128xf32>
    %4 = vector.broadcast %3 : vector<1x128xf32> to vector<64x128xf32>
    %5 = arith.addf %2, %4 : vector<64x128xf32>
    %c0_5 = arith.constant 0 : index
    %c0_6 = arith.constant 0 : index
    %6 = vector.load %arg5[%c0_5, %c0_6] : memref<64x128xf32, #tpu.memory_space<vmem>>, vector<64x128xf32>
    tpu.vector_store %arg5[%c0_5, %c0_6], %5 {strides = array<i32>} : memref<64x128xf32, #tpu.memory_space<vmem>>, vector<64x128xf32>,
    return
  }
  func.func @transform_0(%arg0: i32, %arg1: i32) -> (i32, i32) {
    %c0_i32 = arith.constant 0 : i32
    %c0_i32_0 = arith.constant 0 : i32
    return %arg1, %c0_i32 : i32, i32
  }
  func.func @transform_1(%arg0: i32, %arg1: i32) -> (i32, i32) {
    %c0_i32 = arith.constant 0 : i32
    %c0_i32_0 = arith.constant 0 : i32
    return %c0_i32, %arg0 : i32, i32
  }
  func.func @transform_2(%arg0: i32, %arg1: i32) -> (i32, i32) {
    %c0_i32 = arith.constant 0 : i32
    %c0_i32_0 = arith.constant 0 : i32
    return %c0_i32, %arg0 : i32, i32
  }
  func.func @transform_3(%arg0: i32, %arg1: i32) -> (i32, i32) {
    %c0_i32 = arith.constant 0 : i32
    return %arg1, %arg0 : i32, i32
  }
}

</mosaic_0001>

<bundles_post_ra>
// kernel: tpu_custom_call.1
= control target key start
LH: loop header
LB: loop body
LE: loop exit
PB: predicated region body
PF: predicated region fallthrough
CT: control target
= control target key end

     0   :  { %s246_s0 = inlined_call_operand.vmem [shape: f32[64,32], index: 0, kind: input, shape index: {}]   ;;  %s247_s1 = inlined_call_operand.vmem [shape: f32[32,128], index: 1, kind: input, shape index: {}]   ;;  %s248_s2 = inlined_call_operand.vmem [shape: f32[1,128], index: 2, kind: input, shape index: {}]   ;;  %s249_s3 = inlined_call_operand.hbm [shape: f32[64,128], index: 3, kind: output, shape index: {}]  }
   0x1   :  { %v26_v0 = vld [vmem:[%s247_s1 + $0x18] sm:$0xff]  ;;  %v25_v1 = vld [vmem:[%s247_s1 + $0x10] sm:$0xff]  ;;  %v24_v2 = vld [vmem:[%s247_s1 + $0x8] sm:$0xff] }
   0x2   :  { %132 = vmatpush.msra.mxu2 %v26_v0  ;;  %133 = vmatpush.msra.mxu3 %v26_v0  ;;  %v23_v3 = vld [vmem:[%s247_s1] sm:$0xff] }
   0x3   :  { %68 = vmatpush.msra.mxu0 %v26_v0  ;;  %131 = vmatpush.msra.mxu1 %v26_v0 }
   0x4   :  { %135 = vmatpush.msra.mxu2 %v25_v1  ;;  %136 = vmatpush.msra.mxu3 %v25_v1 }
   0x5   :  { %69 = vmatpush.msra.mxu0 %v25_v1  ;;  %134 = vmatpush.msra.mxu1 %v25_v1 }
   0x6   :  { %8 = vsyncpa [#allocation3], 0  ;;  %138 = vmatpush.msra.mxu2 %v24_v2  ;;  %139 = vmatpush.msra.mxu3 %v24_v2  ;;  %v19_v4 = vld [vmem:[%s246_s0 + $0x20] sm:$0xff]  ;;  %vm31_vm0 = vcmask 261120   ;;  %v21_v5 = vld [vmem:[%s246_s0 + $0x30] sm:$0xff]  ;;  %s111_s12 = sshll.u32 %s249_s3, 4  ;;  %s112_s12 = int_to_ptr.hbm [resolvable:$true] %s111_s12 }
   0x7   :  { %70 = vmatpush.msra.mxu0 %v24_v2  ;;  %137 = vmatpush.msra.mxu1 %v24_v2  ;;  %v15_v6 = vld [vmem:[%s246_s0] sm:$0xff]  ;;  %v17_v7 = vld [vmem:[%s246_s0 + $0x10] sm:$0xff]  ;;  %v20_v8 = vld [vmem:[%s246_s0 + $0x28] sm:$0xff]  ;;  %s174_s13 = smov 128   ;;  %s175_s14 = smov 8  }
   0x8   :  { %141 = vmatpush.msra.mxu2 %v23_v3  ;;  %142 = vmatpush.msra.mxu3 %v23_v3  ;;  %v22_v9 = vld [vmem:[%s246_s0 + $0x38] sm:$0xff]  ;;  %v16_v10 = vld [vmem:[%s246_s0 + $0x8] sm:$0xff]  ;;  %v146_v12 = vld [vmem:[%s248_s2] ss:$0 sm:$0xff] }
   0x9   :  { %127 = vmatmul.msk.f32.vlgmr.msra.gmra.mxu2 %vm31_vm0, %v19_v4  ;;  %129 = vmatmul.msk.f32.vlgmr.msra.gmra.mxu3 %vm31_vm0, %v21_v5  ;;  %v18_v11 = vld [vmem:[%s246_s0 + $0x18] sm:$0xff]  ;;  %s173_s0 = smov [#allocation2]  }
   0xa   :  { %71 = vmatpush.msra.mxu0 %v23_v3  ;;  %140 = vmatpush.msra.mxu1 %v23_v3  ;;  %s109_s10 = sshll.u32 %s173_s0, 4  ;;  %s110_s10 = int_to_ptr.vmem [resolvable:$true] %s109_s10 }
   0xb   :  { %123 = vmatmul.msk.f32.vlgmr.msra.gmra.mxu0 %vm31_vm0, %v15_v6  ;;  %125 = vmatmul.msk.f32.vlgmr.msra.gmra.mxu1 %vm31_vm0, %v17_v7 }
  0x11   :  { %128 = vmatmul.msk.f32.gmra.mxu2 %vm31_vm0, %v20_v8  ;;  %130 = vmatmul.msk.f32.gmra.mxu3 %vm31_vm0, %v22_v9 }
  0x13   :  { %124 = vmatmul.msk.f32.gmra.mxu0 %vm31_vm0, %v16_v10  ;;  %126 = vmatmul.msk.f32.gmra.mxu1 %vm31_vm0, %v18_v11 }
  0x88   :  { %v73_v13 = vpop.f32.mrf.mxu0  ;;  %v79_v14 = vpop.f32.mrf.mxu1 }
  0x89   :  { %v74_v15 = vadd.f32 %v146_v12, %v73_v13  ;;  %v80_v16 = vadd.f32 %v146_v12, %v79_v14 }
  0x8b   :  { %97 = vst [vmem:[#allocation2] sm:$0xff] %v74_v15 }
  0x8c   :  { %99 = vst [vmem:[#allocation2 + $0x10] sm:$0xff] %v80_v16  ;;  %v85_v17 = vpop.f32.mrf.mxu2  ;;  %v91_v18 = vpop.f32.mrf.mxu3 }
  0x8d   :  { %v86_v19 = vadd.f32 %v146_v12, %v85_v17  ;;  %v92_v20 = vadd.f32 %v146_v12, %v91_v18 }
  0x8f   :  { %101 = vst [vmem:[#allocation2 + $0x20] sm:$0xff] %v86_v19 }
  0x90   :  { %103 = vst [vmem:[#allocation2 + $0x30] sm:$0xff] %v92_v20  ;;  %v76_v21 = vpop.f32.mrf.mxu0  ;;  %v82_v22 = vpop.f32.mrf.mxu1 }
  0x91   :  { %v77_v23 = vadd.f32 %v146_v12, %v76_v21  ;;  %v83_v24 = vadd.f32 %v146_v12, %v82_v22 }
  0x93   :  { %98 = vst [vmem:[#allocation2 + $0x8] sm:$0xff] %v77_v23 }
  0x94   :  { %100 = vst [vmem:[#allocation2 + $0x18] sm:$0xff] %v83_v24  ;;  %v88_v25 = vpop.f32.mrf.mxu2  ;;  %v94_v26 = vpop.f32.mrf.mxu3 }
  0x95   :  { %v89_v27 = vadd.f32 %v146_v12, %v88_v25  ;;  %v95_v28 = vadd.f32 %v146_v12, %v94_v26 }
  0x97   :  { %102 = vst [vmem:[#allocation2 + $0x28] sm:$0xff] %v89_v27 }
  0x98   :  { %104 = vst [vmem:[#allocation2 + $0x38] sm:$0xff] %v95_v28 }
  0x99   :  { %117 = dma.vmem_to_hbm [thread:$0]  %s110_s10, 1024, %s112_s12, [#allocation3], %s174_s13, %s174_s13, %s175_s14  }
  0x9a   :  { %171 = dma.done.wait [#allocation3], 1024  }
  0x9b   :  { %172 = vsyncadd [#allocation3], 4294966272 }
  0x9c   :  { %122 = vsyncpa [#allocation3], 1 }

</bundles_post_ra>
